<compile_context>
chip_gen: v5e
topology: v5e:2x2
jax: 0.10.0
libtpu: 0.0.40
codegen_flags: <defaults>
</compile_context>

<pallas_src>
import math

import numpy as np
import jax
import jax.numpy as jnp
from jax.experimental import pallas as pl
from jax.experimental.pallas import tpu as pltpu


def _mvlinear_kernel(x_ref, w_ref, b_ref, o_ref):
    # x_ref: [block_b, M*I], w_ref: [M*I, N*I] (block-diagonal per blade),
    # b_ref: [1, N*I] (bias embedded on the scalar blade), o_ref: [block_b, N*I].
    acc = jnp.dot(x_ref[...], w_ref[...], preferred_element_type=jnp.float32)
    o_ref[...] = (acc + b_ref[...].astype(jnp.float32)).astype(o_ref.dtype)


def _pick_block_b(bf, k, n_out, itemsize, vmem_budget_bytes=24 << 20):
    """Largest row-tile whose double-buffered in+out footprint fits the budget."""
    per_row = 2 * (k + n_out) * itemsize          # 2x for double buffering
    blk = vmem_budget_bytes // max(per_row, 1)
    blk = int(min(blk, 32768))
    blk = max(blk - (blk % 8), 8)                 # (8, 128) sublane constraint
    if bf <= blk:
        return bf                                 # single full-extent tile
    return blk


def _mvlinear_pallas(x2d, w_bd, bias_row, *, block_b=None):
    """x2d: [Bf, M*I], w_bd: [M*I, N*I], bias_row: [1, N*I] -> [Bf, N*I]."""
    bf, k = x2d.shape
    n_out = w_bd.shape[-1]
    itemsize = jnp.dtype(x2d.dtype).itemsize

    if block_b is None:
        block_b = _pick_block_b(bf, k, n_out, itemsize)
    else:
        if bf <= block_b:
            block_b = bf
        else:
            block_b = max(block_b - (block_b % 8), 8)

    grid = (pl.cdiv(bf, block_b),)

    # Double-buffered tiles + resident weight/bias + headroom; capped so it is
    # safe on v7x (64 MiB VMEM per TC) as well as v5e/v6e.
    vmem_limit = int(2 * block_b * (k + n_out) * itemsize
                     + (k + 1) * n_out * itemsize + (4 << 20))
    vmem_limit = min(max(vmem_limit, 8 << 20), 48 << 20)

    return pl.pallas_call(
        _mvlinear_kernel,
        out_shape=jax.ShapeDtypeStruct((bf, n_out), x2d.dtype),
        grid_spec=pltpu.PrefetchScalarGridSpec(
            num_scalar_prefetch=0,
            grid=grid,
            in_specs=[
                # activations: new batch tile every step
                pl.BlockSpec((block_b, k), lambda j: (j, 0)),
                # block-diagonal weight: resident (constant over the grid)
                pl.BlockSpec((k, n_out), lambda j: (0, 0)),
                # embedded bias row: resident
                pl.BlockSpec((1, n_out), lambda j: (0, 0)),
            ],
            out_specs=pl.BlockSpec((block_b, n_out), lambda j: (j, 0)),
        ),
        compiler_params=pltpu.CompilerParams(
            dimension_semantics=("parallel",),
            vmem_limit_bytes=vmem_limit),
    )(x2d, w_bd, bias_row)


def mvlinear_forward(x, weight, bias=None, *, subspace_dims=(1, 3, 3, 1),
                     subspaces=True, block_b=None):
    """JAX/Pallas equivalent of MVLinear.forward.

    x      : [B, in_features, *spatial, n_blades]  (blades grade-sorted)
    weight : [out_features, in_features, n_subspaces] if subspaces
             else [out_features, in_features]
    bias   : [1, out_features, 1] or None
    returns: [B, out_features, *spatial, n_blades]
    """
    x = jnp.asarray(x)                               # keep caller dtype (bf16 ok)
    dtype = x.dtype
    n_blades = x.shape[-1]
    b, m = x.shape[0], x.shape[1]
    spatial = x.shape[2:-1]
    n = weight.shape[0]
    weight = jnp.asarray(weight, dtype)

    # --- per-blade weight (repeat_interleave over grades) --------------------
    if subspaces:
        assert int(np.sum(subspace_dims)) == n_blades
        grade_of_blade = np.repeat(np.arange(len(subspace_dims)),
                                   np.asarray(subspace_dims))
        w_blade = weight[:, :, grade_of_blade]                     # [N, M, I]
    else:
        w_blade = jnp.broadcast_to(weight[:, :, None], (n, m, n_blades))

    # --- block-diagonal expansion (host side, once per call) -----------------
    # W_bd[m*I + i, n*I + j] = w_blade[n, m, i] * (i == j)
    eye = jnp.eye(n_blades, dtype=dtype)
    w_bd = jnp.einsum('nmi,ij->minj', w_blade, eye).reshape(
        m * n_blades, n * n_blades)

    # --- algebra.embed(bias, (0,)): bias lives on the scalar blade only ------
    bias_nd = jnp.zeros((n, n_blades), dtype)
    if bias is not None:
        bias_nd = bias_nd.at[:, 0].set(jnp.asarray(bias, dtype).reshape(n))
    bias_row = bias_nd.reshape(1, n * n_blades)

    # --- fold batch (+ spatial) into rows; blades stay minor -> free reshape -
    # [B, M, *spatial, I] -> [B, *spatial, M, I] -> [Bf, M*I]
    # (moveaxis is a no-op when there are no spatial dims)
    x_rows = jnp.moveaxis(x, 1, -2).reshape(-1, m * n_blades)

    out_rows = _mvlinear_pallas(x_rows, w_bd, bias_row, block_b=block_b)

    out = out_rows.reshape((b,) + spatial + (n, n_blades))
    out = jnp.moveaxis(out, -2, 1)                                 # [B, N, *sp, I]
    return out


def _reference(x, weight, bias, subspace_dims, subspaces=True):
    """Pure-JAX reference mirroring the PyTorch forward."""
    n_blades = x.shape[-1]
    n = weight.shape[0]
    if subspaces:
        grade = np.repeat(np.arange(len(subspace_dims)),
                          np.asarray(subspace_dims))
        w_blade = weight[:, :, grade]
        out = jnp.einsum('bm...i,nmi->bn...i', x, w_blade,
                         precision=jax.lax.Precision.HIGHEST)
    else:
        out = jnp.einsum('bm...i,nm->bn...i', x, weight,
                         precision=jax.lax.Precision.HIGHEST)
    if bias is not None:
        bias_emb = jnp.zeros((1, n, n_blades), x.dtype)
        bias_emb = bias_emb.at[:, :, 0].set(bias[:, :, 0])
        extra = out.ndim - bias_emb.ndim            # unsqueeze_like(..., dim=2)
        bias_emb = bias_emb.reshape(
            bias_emb.shape[:2] + (1,) * extra + bias_emb.shape[2:])
        out = out + bias_emb
    return out


if __name__ == "__main__":
    key = jax.random.PRNGKey(0)
    kx, kw, kb, kx2, kx3 = jax.random.split(key, 5)

    # Clifford algebra Cl(3,0): 2**3 = 8 blades, grade dims (1, 3, 3, 1).
    subspace_dims = (1, 3, 3, 1)
    n_blades = 8
    B, M, N = 4, 8, 16

    x = jax.random.normal(kx, (B, M, n_blades), dtype=jnp.float32)
    weight = jax.random.normal(kw, (N, M, len(subspace_dims)),
                               dtype=jnp.float32) / math.sqrt(M)
    bias = jax.random.normal(kb, (1, N, 1), dtype=jnp.float32)

    out = mvlinear_forward(x, weight, bias, subspace_dims=subspace_dims,
                           subspaces=True)
    jax.block_until_ready(out)
    ref = _reference(x, weight, bias, subspace_dims, subspaces=True)
    assert out.shape == (B, N, n_blades)
    assert jnp.allclose(out, ref, atol=5e-4, rtol=5e-4), \
        float(jnp.max(jnp.abs(out - ref)))

    # 'bm...i' path (extra spatial dim) + bias=None path.
    S = 5
    x2 = jax.random.normal(kx2, (2, M, S, n_blades), dtype=jnp.float32)
    out2 = mvlinear_forward(x2, weight, None, subspace_dims=subspace_dims,
                            subspaces=True)
    jax.block_until_ready(out2)
    ref2 = _reference(x2, weight, None, subspace_dims, subspaces=True)
    assert out2.shape == (2, N, S, n_blades)
    assert jnp.allclose(out2, ref2, atol=5e-4, rtol=5e-4), \
        float(jnp.max(jnp.abs(out2 - ref2)))

    # Multi-step grid with a ragged last tile (exercises the implicit OOB
    # masking that replaced the explicit pad/slice).
    B3 = 300
    x3 = jax.random.normal(kx3, (B3, M, n_blades), dtype=jnp.float32)
    out3 = mvlinear_forward(x3, weight, bias, subspace_dims=subspace_dims,
                            subspaces=True, block_b=64)
    jax.block_until_ready(out3)
    ref3 = _reference(x3, weight, bias, subspace_dims, subspaces=True)
    assert out3.shape == (B3, N, n_blades)
    assert jnp.allclose(out3, ref3, atol=5e-4, rtol=5e-4), \
        float(jnp.max(jnp.abs(out3 - ref3)))

    # TODO(synk): the `algebra` object is represented only by its grade
    # dimensions (subspace_dims) + scalar-blade embed, which is all forward()
    # needs; the full geometric-product tables are not required here.
    print("KERNEL_OK")
</pallas_src>

<mosaic_0001>
module attributes {stable_mosaic.version = 11 : i64} {
  func.func @_mvlinear_kernel(%arg0: i32, %arg1: memref<4x64xf32, #tpu.memory_space<vmem>>, %arg2: memref<64x128xf32, #tpu.memory_space<vmem>>, %arg3: memref<1x128xf32, #tpu.memory_space<vmem>>, %arg4: memref<4x128xf32, #tpu.memory_space<vmem>>) attributes {dimension_semantics = [#tpu.dimension_semantics<parallel>], iteration_bounds = array<i64: 1>, scalar_prefetch = 0 : i64, scratch_operands = 0 : i64, tpu.core_type = #tpu.core_type<tc>, window_params = [{transform_indices = @transform_0, window_bounds = array<i64: 4, 64>}, {pipeline_mode = #tpu.pipeline_mode<synchronous>, transform_indices = @transform_1, window_bounds = array<i64: 64, 128>}, {pipeline_mode = #tpu.pipeline_mode<synchronous>, transform_indices = @transform_2, window_bounds = array<i64: 1, 128>}, {transform_indices = @transform_3, window_bounds = array<i64: 4, 128>}]} {
    %c0 = arith.constant 0 : index
    %c0_0 = arith.constant 0 : index
    %0 = vector.load %arg1[%c0, %c0_0] : memref<4x64xf32, #tpu.memory_space<vmem>>, vector<4x64xf32>
    %c0_1 = arith.constant 0 : index
    %c0_2 = arith.constant 0 : index
    %1 = vector.load %arg2[%c0_1, %c0_2] : memref<64x128xf32, #tpu.memory_space<vmem>>, vector<64x128xf32>
    %cst = arith.constant dense<0.000000e+00> : vector<4x128xf32>
    %2 = tpu.matmul %0, %1, %cst {dimension_numbers = #tpu.dot_dimension_numbers<[1], [0], [0], [1], [0, 0, 1, 1], [], []>} : vector<4x64xf32>, vector<64x128xf32>, vector<4x128xf32> -> vector<4x128xf32>
    %c0_3 = arith.constant 0 : index
    %c0_4 = arith.constant 0 : index
    %3 = vector.load %arg3[%c0_3, %c0_4] : memref<1x128xf32, #tpu.memory_space<vmem>>, vector<1x128xf32>
    %4 = vector.broadcast %3 : vector<1x128xf32> to vector<4x128xf32>
    %5 = arith.addf %2, %4 : vector<4x128xf32>
    %c0_5 = arith.constant 0 : index
    %c0_6 = arith.constant 0 : index
    %6 = vector.load %arg4[%c0_5, %c0_6] : memref<4x128xf32, #tpu.memory_space<vmem>>, vector<4x128xf32>
    tpu.vector_store %arg4[%c0_5, %c0_6], %5 {strides = array<i32>} : memref<4x128xf32, #tpu.memory_space<vmem>>, vector<4x128xf32>,
    return
  }
  func.func @transform_0(%arg0: i32) -> (i32, i32) {
    %c0_i32 = arith.constant 0 : i32
    %c0_i32_0 = arith.constant 0 : i32
    return %arg0, %c0_i32 : i32, i32
  }
  func.func @transform_1(%arg0: i32) -> (i32, i32) {
    %c0_i32 = arith.constant 0 : i32
    %c0_i32_0 = arith.constant 0 : i32
    %c0_i32_1 = arith.constant 0 : i32
    return %c0_i32, %c0_i32_0 : i32, i32
  }
  func.func @transform_2(%arg0: i32) -> (i32, i32) {
    %c0_i32 = arith.constant 0 : i32
    %c0_i32_0 = arith.constant 0 : i32
    %c0_i32_1 = arith.constant 0 : i32
    return %c0_i32, %c0_i32_0 : i32, i32
  }
  func.func @transform_3(%arg0: i32) -> (i32, i32) {
    %c0_i32 = arith.constant 0 : i32
    %c0_i32_0 = arith.constant 0 : i32
    return %arg0, %c0_i32 : i32, i32
  }
}

</mosaic_0001>

<bundles_post_ra>
// kernel: tpu_custom_call.1
= control target key start
LH: loop header
LB: loop body
LE: loop exit
PB: predicated region body
PF: predicated region fallthrough
CT: control target
= control target key end

     0   :  { %8 = vsyncpa [#allocation3], 0  ;;  %s223_s0 = inlined_call_operand.hbm [shape: f32[4,64], index: 0, kind: input, shape index: {}]   ;;  %s224_s1 = inlined_call_operand.hbm [shape: f32[64,128], index: 1, kind: input, shape index: {}]   ;;  %s225_s2 = inlined_call_operand.vmem [shape: f32[1,128], index: 2, kind: input, shape index: {}]   ;;  %s226_s3 = inlined_call_operand.hbm [shape: f32[4,128], index: 3, kind: output, shape index: {}]  }
   0x1   :  { %9 = vsyncpa [#allocation6], 0 }
   0x2   :  { %10 = vsyncpa [#allocation4], 0  ;;  %s16_s14 = sshll.u32 %s223_s0, 4  ;;  %s186_s15 = smov [#allocation2]   ;;  %s17_s14 = int_to_ptr.hbm [resolvable:$true] %s16_s14 }
   0x3   :  { %s18_s16 = sshll.u32 %s186_s15, 4  ;;  %s26_s19 = sshll.u32 %s224_s1, 4  ;;  %s19_s16 = int_to_ptr.vmem [resolvable:$true] %s18_s16  ;;  %s27_s19 = int_to_ptr.hbm [resolvable:$true] %s26_s19 }
   0x4   :  { %21 = dma.hbm_to_vmem [thread:$0]  %s17_s14, 64, %s19_s16, [#allocation3]  }
   0x5   :  { %s187_s20 = smov [#allocation5]   ;;  %s188_s22 = smov 128  }
   0x6   :  { %s28_s21 = sshll.u32 %s187_s20, 4  ;;  %s189_s23 = smov 8   ;;  %s29_s21 = int_to_ptr.vmem [resolvable:$true] %s28_s21 }
   0x7   :  { %34 = dma.hbm_to_vmem [thread:$0]  %s27_s19, 1024, %s29_s21, [#allocation6], %s188_s22, %s188_s22, %s189_s23  }
   0x8   :  { %180 = dma.done.wait [#allocation3], 64  }
   0x9   :  { %181 = vsyncadd [#allocation3], 4294967232 }
   0xa   :  { %182 = dma.done.wait [#allocation6], 1024  }
   0xb   :  { %183 = vsyncadd [#allocation6], 4294966272  ;;  %v53_v0 = vld [vmem:[#allocation5 + $0x38] sm:$0xff]  ;;  %v52_v1 = vld [vmem:[#allocation5 + $0x30] sm:$0xff]  ;;  %vm58_vm0 = vcmask 523264   ;;  %s190_s24 = smov [#allocation7]  }
   0xc   :  { %70 = vmatpush.msra.mxu0 %v53_v0  ;;  %v51_v2 = vld [vmem:[#allocation5 + $0x28] sm:$0xff]  ;;  %v50_v3 = vld [vmem:[#allocation5 + $0x20] sm:$0xff]  ;;  %v49_v4 = vld [vmem:[#allocation5 + $0x18] sm:$0xff]  ;;  %s88_s25 = sshll.u32 %s190_s24, 4  ;;  %s90_s28 = sshll.u32 %s226_s3, 4  ;;  %s89_s25 = int_to_ptr.vmem [resolvable:$true] %s88_s25  ;;  %s91_s28 = int_to_ptr.hbm [resolvable:$true] %s90_s28 }
   0xd   :  { %v48_v5 = vld [vmem:[#allocation5 + $0x10] sm:$0xff]  ;;  %v47_v6 = vld [vmem:[#allocation5 + $0x8] sm:$0xff]  ;;  %v46_v7 = vld [vmem:[#allocation5] sm:$0xff] }
   0xe   :  { %71 = vmatpush.msra.mxu0 %v52_v1  ;;  %v45_v8 = vld [vmem:[#allocation2] sm:$0xf] }
   0xf   :  { %v107_v9 = vld [vmem:[%s225_s2] ss:$0 sm:$0xff] }
  0x10   :  { %72 = vmatpush.msra.mxu0 %v51_v2 }
  0x12   :  { %73 = vmatpush.msra.mxu0 %v50_v3 }
  0x14   :  { %74 = vmatpush.msra.mxu0 %v49_v4 }
  0x16   :  { %75 = vmatpush.msra.mxu0 %v48_v5 }
  0x18   :  { %76 = vmatpush.msra.mxu0 %v47_v6 }
  0x1a   :  { %77 = vmatpush.msra.mxu0 %v46_v7 }
  0x1b   :  { %101 = vmatmul.msk.f32.vlgmr.msra.gmra.mxu0 %vm58_vm0, %v45_v8 }
  0x98   :  { %v79_v10 = vpop.f32.mrf.mxu0 }
  0x99   :  { %v80_v11 = vadd.f32 %v107_v9, %v79_v10 }
  0x9b   :  { %82 = vst [vmem:[#allocation7] sm:$0xf] %v80_v11 }
  0x9c   :  { %93 = dma.vmem_to_hbm [thread:$0]  %s89_s25, 64, %s91_s28, [#allocation4]  }
  0x9d   :  { %184 = dma.done.wait [#allocation4], 64  }
  0x9e   :  { %185 = vsyncadd [#allocation4], 4294967232 }
  0x9f   :  { %98 = vsyncpa [#allocation3], 1 }
  0xa0   :  { %99 = vsyncpa [#allocation6], 1 }
  0xa1   :  { %100 = vsyncpa [#allocation4], 1 }

</bundles_post_ra>
